<compile_context>
chip_gen: v7x
topology: tpu7x:2x2x1
jax: 0.10.0
libtpu: 0.0.40
codegen_flags: <defaults>
</compile_context>

<pallas_src>
from functools import partial

import numpy as np
import jax
import jax.numpy as jnp
from jax.experimental import pallas as pl
from jax.experimental.pallas import tpu as pltpu


def critic_kernel(x_ref, w1_ref, b1_ref, w2_ref, b2_ref, out_ref):
    """Fused MLP tile: out = sum(relu(x @ w1 + b1) * w2_row, -1) + b2.

    Shapes inside the kernel (Hp = padded hidden, multiple of 128):
      x:(tb, D)  w1:(D, Hp)  b1:(1, Hp)  w2_row:(1, Hp)  b2:(1,1) SMEM  out:(tb, 1)
    """
    # fc1 (MXU) + bias + ReLU (VPU), lane-dense (tb, Hp) intermediate.
    h = jnp.dot(x_ref[...], w1_ref[...], preferred_element_type=jnp.float32)
    h = jnp.maximum(h + b1_ref[...], 0.0)
    # state_value: N=1 output -> do it as a lane reduce (XLU) instead of an
    # MXU matmul that would use a single output column.
    v = jnp.sum(h * w2_ref[...], axis=-1, keepdims=True)
    out_ref[...] = v + b2_ref[0, 0]


def pad_params(params, *, lane=128):
    """One-time (init-time) repack of the Critic weights for the kernel.

    Weights come in x @ W layout; the hidden dim is zero-padded to a multiple
    of 128 so the intermediate activation tile is lane-dense.  Exact because
    relu(0) = 0 and the corresponding w2 lanes are zero.
    """
    D, H = params["w1"].shape
    Hp = lane * pl.cdiv(H, lane)
    w1 = jnp.zeros((D, Hp), jnp.float32).at[:, :H].set(params["w1"])
    b1 = jnp.zeros((1, Hp), jnp.float32).at[:, :H].set(params["b1"])
    w2_row = jnp.zeros((1, Hp), jnp.float32).at[:, :H].set(params["w2"].reshape(1, H))
    b2 = params["b2"].reshape(1, 1).astype(jnp.float32)
    return {"w1": w1, "b1": b1, "w2_row": w2_row, "b2": b2}


@partial(jax.jit, static_argnames=("block_b",))
def critic_forward(x, padded, *, block_b=256):
    """x: (B, num_state) float32, padded: output of pad_params. Returns (B, 1)."""
    B, D = x.shape
    Hp = padded["w1"].shape[1]
    # Batch tile: <=256 rows keeps the (tb, Hp) f32 intermediate within vreg
    # capacity; for small B the tile is the whole batch (full-dim block).
    tb = min(block_b, B)
    grid = (pl.cdiv(B, tb),)

    return pl.pallas_call(
        critic_kernel,
        out_shape=jax.ShapeDtypeStruct((B, 1), jnp.float32),
        grid=grid,
        in_specs=[
            pl.BlockSpec((tb, D), lambda i: (i, 0)),          # x: tiled over batch
            pl.BlockSpec((D, Hp), lambda i: (0, 0)),          # w1: resident
            pl.BlockSpec((1, Hp), lambda i: (0, 0)),          # b1: resident
            pl.BlockSpec((1, Hp), lambda i: (0, 0)),          # w2 row: resident
            pl.BlockSpec(memory_space=pltpu.MemorySpace.SMEM),  # b2 scalar
        ],
        out_specs=pl.BlockSpec((tb, 1), lambda i: (i, 0)),
        compiler_params=pltpu.CompilerParams(
            dimension_semantics=("parallel",)),               # megacore on v7x
    )(x, padded["w1"], padded["b1"], padded["w2_row"], padded["b2"])


def init_params(key, num_state, hidden=100):
    """Deterministic PyTorch-style uniform init for Critic's two Linear layers.

    Weights are stored transposed (fan_in, fan_out) so the kernel computes x @ W.
    """
    k1, k2, k3, k4 = jax.random.split(key, 4)
    u = lambda k, shape, bound: jax.random.uniform(k, shape, jnp.float32, -bound, bound)
    bnd1 = 1.0 / np.sqrt(num_state)   # fc1 fan_in = num_state
    bnd2 = 1.0 / np.sqrt(hidden)      # state_value fan_in = hidden
    return {
        "w1": u(k1, (num_state, hidden), bnd1),
        "b1": u(k2, (1, hidden), bnd1),
        "w2": u(k3, (hidden, 1), bnd2),
        "b2": u(k4, (1, 1), bnd2),
    }


def critic_reference(x, p):
    """Pure-JAX reference of the PyTorch forward pass for validation."""
    h = jnp.maximum(x @ p["w1"] + p["b1"], 0.0)
    return h @ p["w2"] + p["b2"]


if __name__ == "__main__":
    B, NUM_STATE = 2, 4          # small shapes consistent with the module
    key = jax.random.PRNGKey(0)
    kx, kp = jax.random.split(key)

    x = jax.random.normal(kx, (B, NUM_STATE), dtype=jnp.float32)
    params = init_params(kp, NUM_STATE, hidden=100)
    padded = jax.tree_util.tree_map(jax.block_until_ready, pad_params(params))

    out = critic_forward(x, padded)
    jax.block_until_ready(out)

    ref = critic_reference(x, params)
    assert out.shape == (B, 1)
    assert np.allclose(np.asarray(out), np.asarray(ref), atol=1e-4, rtol=1e-4)
    print("KERNEL_OK")
</pallas_src>

<mosaic_0001>
module attributes {stable_mosaic.version = 11 : i64} {
  func.func @critic_kernel(%arg0: i32, %arg1: memref<2x4xf32, #tpu.memory_space<vmem>>, %arg2: memref<4x128xf32, #tpu.memory_space<vmem>>, %arg3: memref<1x128xf32, #tpu.memory_space<vmem>>, %arg4: memref<1x128xf32, #tpu.memory_space<vmem>>, %arg5: memref<1x1xf32, #tpu.memory_space<smem>>, %arg6: memref<2x1xf32, #tpu.memory_space<vmem>>) attributes {dimension_semantics = [#tpu.dimension_semantics<parallel>], iteration_bounds = array<i64: 1>, scalar_prefetch = 0 : i64, scratch_operands = 0 : i64, tpu.core_type = #tpu.core_type<tc>, window_params = [{transform_indices = @transform_0, window_bounds = array<i64: 2, 4>}, {pipeline_mode = #tpu.pipeline_mode<synchronous>, transform_indices = @transform_1, window_bounds = array<i64: 4, 128>}, {pipeline_mode = #tpu.pipeline_mode<synchronous>, transform_indices = @transform_2, window_bounds = array<i64: 1, 128>}, {pipeline_mode = #tpu.pipeline_mode<synchronous>, transform_indices = @transform_3, window_bounds = array<i64: 1, 128>}, {transform_indices = @transform_4, window_bounds = array<i64: 1, 1>}, {transform_indices = @transform_5, window_bounds = array<i64: 2, 1>}]} {
    %c0 = arith.constant 0 : index
    %c0_0 = arith.constant 0 : index
    %0 = vector.load %arg1[%c0, %c0_0] : memref<2x4xf32, #tpu.memory_space<vmem>>, vector<2x4xf32>
    %c0_1 = arith.constant 0 : index
    %c0_2 = arith.constant 0 : index
    %1 = vector.load %arg2[%c0_1, %c0_2] : memref<4x128xf32, #tpu.memory_space<vmem>>, vector<4x128xf32>
    %cst = arith.constant dense<0.000000e+00> : vector<2x128xf32>
    %2 = tpu.matmul %0, %1, %cst {dimension_numbers = #tpu.dot_dimension_numbers<[1], [0], [0], [1], [0, 0, 1, 1], [], []>} : vector<2x4xf32>, vector<4x128xf32>, vector<2x128xf32> -> vector<2x128xf32>
    %c0_3 = arith.constant 0 : index
    %c0_4 = arith.constant 0 : index
    %3 = vector.load %arg3[%c0_3, %c0_4] : memref<1x128xf32, #tpu.memory_space<vmem>>, vector<1x128xf32>
    %4 = vector.broadcast %3 : vector<1x128xf32> to vector<2x128xf32>
    %5 = arith.addf %2, %4 : vector<2x128xf32>
    %cst_5 = arith.constant 0.000000e+00 : f32
    %6 = vector.broadcast %cst_5 : f32 to vector<2x128xf32>
    %7 = arith.maximumf %5, %6 : vector<2x128xf32>
    %c0_6 = arith.constant 0 : index
    %c0_7 = arith.constant 0 : index
    %8 = vector.load %arg4[%c0_6, %c0_7] : memref<1x128xf32, #tpu.memory_space<vmem>>, vector<1x128xf32>
    %9 = vector.broadcast %8 : vector<1x128xf32> to vector<2x128xf32>
    %10 = arith.mulf %7, %9 : vector<2x128xf32>
    %cst_8 = arith.constant dense<0.000000e+00> : vector<2xf32>
    %11 = vector.multi_reduction <add>, %10, %cst_8 [1] : vector<2x128xf32> to vector<2xf32>
    %12 = vector.shape_cast %11 : vector<2xf32> to vector<2x1xf32>
    %c0_9 = arith.constant 0 : index
    %c0_10 = arith.constant 0 : index
    %13 = memref.load %arg5[%c0_9, %c0_10] : memref<1x1xf32, #tpu.memory_space<smem>>
    %14 = vector.broadcast %13 : f32 to vector<2x1xf32>
    %15 = arith.addf %12, %14 : vector<2x1xf32>
    %c0_11 = arith.constant 0 : index
    %c0_12 = arith.constant 0 : index
    %16 = vector.load %arg6[%c0_11, %c0_12] : memref<2x1xf32, #tpu.memory_space<vmem>>, vector<2x1xf32>
    tpu.vector_store %arg6[%c0_11, %c0_12], %15 {strides = array<i32>} : memref<2x1xf32, #tpu.memory_space<vmem>>, vector<2x1xf32>,
    return
  }
  func.func @transform_0(%arg0: i32) -> (i32, i32) {
    %c0_i32 = arith.constant 0 : i32
    %c0_i32_0 = arith.constant 0 : i32
    return %arg0, %c0_i32 : i32, i32
  }
  func.func @transform_1(%arg0: i32) -> (i32, i32) {
    %c0_i32 = arith.constant 0 : i32
    %c0_i32_0 = arith.constant 0 : i32
    %c0_i32_1 = arith.constant 0 : i32
    return %c0_i32, %c0_i32_0 : i32, i32
  }
  func.func @transform_2(%arg0: i32) -> (i32, i32) {
    %c0_i32 = arith.constant 0 : i32
    %c0_i32_0 = arith.constant 0 : i32
    %c0_i32_1 = arith.constant 0 : i32
    return %c0_i32, %c0_i32_0 : i32, i32
  }
  func.func @transform_3(%arg0: i32) -> (i32, i32) {
    %c0_i32 = arith.constant 0 : i32
    %c0_i32_0 = arith.constant 0 : i32
    %c0_i32_1 = arith.constant 0 : i32
    return %c0_i32, %c0_i32_0 : i32, i32
  }
  func.func @transform_4(%arg0: i32) -> (i32, i32) {
    %c0_i32 = arith.constant 0 : i32
    %c0_i32_0 = arith.constant 0 : i32
    %c0_i32_1 = arith.constant 0 : i32
    return %c0_i32, %c0_i32_0 : i32, i32
  }
  func.func @transform_5(%arg0: i32) -> (i32, i32) {
    %c0_i32 = arith.constant 0 : i32
    %c0_i32_0 = arith.constant 0 : i32
    return %arg0, %c0_i32 : i32, i32
  }
}

</mosaic_0001>

<bundles_post_ra>
// kernel: critic_forward.1
= control target key start
LH: loop header
LB: loop body
LE: loop exit
PB: predicated region body
PF: predicated region fallthrough
CT: control target
= control target key end

     0   :  { %vm34_vm0 = vcmask 1043456   ;;  %vm30_vm1 = vcmask 31744   ;;  %v143_v0 = vmov 0.0   ;;  %vm144_vm2 = vmmov 0   ;;  %s193_s1 = inlined_call_operand.vmem [shape: f32[4,128], index: 1, kind: input, shape index: {}]   ;;  %s194_s0 = inlined_call_operand.vmem [shape: f32[2,4], index: 0, kind: input, shape index: {}]   ;;  %s195_s2 = inlined_call_operand.vmem [shape: f32[1,128], index: 2, kind: input, shape index: {}]   ;;  %s196_s3 = inlined_call_operand.vmem [shape: f32[1,128], index: 3, kind: input, shape index: {}]   ;;  %s197_s4 = inlined_call_operand.<no memory space> [shape: f32[1,1], index: 4, kind: input, shape index: {}]   ;;  %s198_s5 = inlined_call_operand.vmem [shape: f32[2,1], index: 5, kind: output, shape index: {}]  }
   0x1   :  { %136 = vmatprep.subr.mxu0 %v143_v0  ;;  %v22_v1 = vld [vmem:[%s193_s1] sm:$0xf]  ;;  %138 = vmatprep.mubr.msk.f32.mxu0 %vm144_vm2, %v143_v0  ;;  %vm117_vm3 = vcmask 1041408   ;;  %v122_v11 = vstv %s197_s4  ;;  %vm124_vm4 = vcmask 1024  }
   0x2   :  { %v21_v2 = vld [vmem:[%s194_s0] sm:$0x3]  ;;  %137 = vmatpush3.msk.msra.mxu0 %vm34_vm0, %v22_v1 }
   0x3   :  { %139 = vmatmul.mubr.msk.f32.vlgmr.msra.gmra.mrb[0].mxu0 %vm30_vm1, %v21_v2  ;;  %v130_v3 = vld [vmem:[%s195_s2] ss:$0 sm:$0xff] }
   0x4   :  { %v133_v7 = vld [vmem:[%s196_s3] ss:$0 sm:$0xff] }
  0xd6   :  { %v104_v4 = vpop.f32.mrb[0].mxu0 }
  0xd7   :  { %v105_v5 = vadd.f32 %v130_v3, %v104_v4  ;;  %v140_v6 = vpop.f32.mrb[1].mxu0 }
  0xd9   :  { %v108_v8 = vmax.f32 %v105_v5, 0.0 }
  0xdb   :  { %v116_v9 = vmul.f32 %v133_v7, %v108_v8 }
  0xdd   :  { %v118_v10 = vsel %vm117_vm3, %v116_v9, 0.0 }
  0xde   :  { %119 = vadd.xlane.f32.xlu0 %v118_v10 }
 0x16b   :  { %v120_v12 = vpop.xlane.xlu0 %119 }
 0x16c   :  { %v123_v13 = vadd.f32 %v122_v11, %v120_v12 }
 0x16e   :  { %125 = vst.msk [vmem:[%s198_s5] sm:$0x3] %vm124_vm4, %v123_v13 }

</bundles_post_ra>
